<compile_context>
chip_gen: v7x
topology: tpu7x:2x2x1
jax: 0.10.0
libtpu: 0.0.40
codegen_flags: <defaults>
</compile_context>

<pallas_src>
import functools

import jax
import jax.numpy as jnp
from jax import lax
from jax.experimental import pallas as pl
from jax.experimental.pallas import tpu as pltpu


def _round_up(n, m):
    return ((n + m - 1) // m) * m


def _vmem_budget_bytes():
    """~80% of physical VMEM per TensorCore.

    v5e/v6e: 128 MiB -> ~102 MiB budget (keep weights resident at all costs).
    v7x:      64 MiB ->  ~51 MiB budget (headroom for Mosaic internal scratch).
    """
    try:
        cap = int(pltpu.get_tpu_info().vmem_capacity_bytes)
    except Exception:
        cap = 64 * 2 ** 20          # unknown chip: assume the smallest (v7x)
    return max(int(0.8 * cap), 32 * 2 ** 20)


def _choose_batch_tile(batch):
    """Multiple of 16 (bf16 sublane packing); prefer full 128/256-row MXU
    tiles and >=2 grid steps (v7x megacore) whenever the batch allows."""
    if batch >= 512:
        return 256
    if batch >= 256:
        return 128
    if batch >= 32:
        return min(_round_up((batch + 1) // 2, 16), 128)
    return _round_up(max(batch, 1), 16)


# ----------------------------- kernels ------------------------------------


def _resident_kernel(x_ref, w_ref, b_ref, out_ref, *, n_layers, matmul_dtype):
    """One batch tile; whole last-block weight stack resident in VMEM.

    x_ref:  (TB, Dp)             input tile
    w_ref:  (n_layers, Dp, Dp)   weights, (in, out) layout, matmul_dtype
    b_ref:  (n_layers, 1, Dp)    biases, f32
    """
    y = x_ref[...].astype(jnp.float32)

    def layer(li, y):
        acc = jnp.dot(y.astype(matmul_dtype), w_ref[li],
                      preferred_element_type=jnp.float32)   # MXU, f32 accumulate
        return jnp.maximum(acc + b_ref[li], 0.0)            # bias + ReLU in f32

    if n_layers <= 8:
        for li in range(n_layers):        # static unroll for shallow blocks
            y = layer(li, y)
    else:
        # bounded code size / live ranges for deep blocks
        y = lax.fori_loop(0, n_layers, layer, y)

    # residual re-read from the input VMEM buffer (no kernel-long f32 copy)
    out_ref[...] = (y + x_ref[...].astype(jnp.float32)).astype(out_ref.dtype)


def _streaming_kernel(x_ref, w_ref, b_ref, out_ref, y_ref, *, n_layers,
                      matmul_dtype):
    """Layer-streamed variant: grid = (batch tiles, layers).

    One (Dp, Dp) weight slab is pipelined into VMEM per grid step; the running
    activation lives in a (TB, Dp) f32 VMEM scratch persisting across the
    layer axis.  x / out tiles stay resident across the layer axis.
    """
    layer_idx = pl.program_id(1)

    @pl.when(layer_idx == 0)
    def _():
        y_ref[...] = x_ref[...].astype(jnp.float32)

    acc = jnp.dot(y_ref[...].astype(matmul_dtype), w_ref[0],
                  preferred_element_type=jnp.float32)
    y_ref[...] = jnp.maximum(acc + b_ref[0], 0.0)

    @pl.when(layer_idx == n_layers - 1)
    def _():
        out_ref[...] = (y_ref[...] + x_ref[...].astype(jnp.float32)
                        ).astype(out_ref.dtype)


# ------------------------- host-side wrappers ------------------------------


def prepare_params(weights, biases, block_layer_counts, *,
                   matmul_dtype=jnp.bfloat16):
    """One-time parameter prep (do NOT call per forward step).

    weights: (L_total, D, D) in PyTorch (out_features, in_features) layout
    biases:  (L_total, 1, D)
    Keeps only the last block (dead-block elimination), transposes weights to
    (in, out) so the MXU RHS is lane-contiguous, casts to `matmul_dtype`, and
    zero-pads the feature dim to a multiple of 128 (skipped when aligned).
    """
    n_last = int(block_layer_counts[-1])
    D = int(weights.shape[-1])
    Dp = _round_up(D, 128)

    w = jnp.swapaxes(weights[-n_last:], 1, 2).astype(matmul_dtype)  # (n,D,D) in,out
    b = biases[-n_last:].astype(jnp.float32)                        # (n,1,D)

    if Dp != D:
        w = jnp.zeros((n_last, Dp, Dp), matmul_dtype).at[:, :D, :D].set(w)
        b = jnp.zeros((n_last, 1, Dp), jnp.float32).at[:, :, :D].set(b)

    return dict(w=w, b=b, n_layers=n_last, d=D, dp=Dp, matmul_dtype=matmul_dtype)


def resdnn_forward(x, params, *, force_streaming=False):
    """ResDNN forward (== PyTorch module output) on prepared params."""
    w, b = params["w"], params["b"]
    n_layers, D, Dp = params["n_layers"], params["d"], params["dp"]
    matmul_dtype = params["matmul_dtype"]

    B, d_in = x.shape
    assert d_in == D, f"feature dim {d_in} != expected {D}"

    itemsize = jnp.dtype(matmul_dtype).itemsize
    act_itemsize = jnp.dtype(x.dtype).itemsize
    budget = _vmem_budget_bytes()
    w_bytes = n_layers * Dp * Dp * itemsize
    b_bytes = n_layers * Dp * 4

    TB = _choose_batch_tile(B)
    # Resident mode if single-buffered weight stack + double-buffered
    # activation tiles fit the per-generation VMEM budget.
    resident = (not force_streaming) and (
        w_bytes + b_bytes + 4 * TB * Dp * act_itemsize <= budget)

    if not resident:
        # Weights are re-fetched once per batch tile when streaming, so use a
        # much larger batch tile to stay MXU-bound.
        TB = min(_round_up(B, 128), 512)
        while TB > 128 and (2 * (Dp * Dp * itemsize + Dp * 4)
                            + 5 * TB * Dp * 4) > budget:
            TB //= 2

    Bp = _round_up(B, TB)
    num_batch_tiles = Bp // TB

    if (Bp, Dp) == (B, D):                    # aligned: skip the padding copy
        x_p = x
    else:
        x_p = jnp.zeros((Bp, Dp), x.dtype).at[:B, :D].set(x)

    flops = 2 * Bp * Dp * Dp * n_layers
    io_bytes = 2 * Bp * Dp * act_itemsize

    if resident:
        cost = pl.CostEstimate(flops=flops, transcendentals=0,
                               bytes_accessed=w_bytes + b_bytes + io_bytes)
        kernel = functools.partial(_resident_kernel, n_layers=n_layers,
                                   matmul_dtype=matmul_dtype)

        def build(single_buffer):
            def const_spec(shape):
                idx = lambda i: (0,) * len(shape)
                if single_buffer:
                    # constant index_map => 2nd pipeline buffer never used
                    return pl.BlockSpec(shape, idx, pipeline_mode=pl.Buffered(1))
                return pl.BlockSpec(shape, idx)

            need = ((1 if single_buffer else 2) * (w_bytes + b_bytes)
                    + 4 * TB * Dp * act_itemsize)
            vmem_limit = int(min(max(int(1.25 * need), 32 * 2 ** 20), budget))
            return pl.pallas_call(
                kernel,
                out_shape=jax.ShapeDtypeStruct((Bp, Dp), x.dtype),
                grid_spec=pltpu.PrefetchScalarGridSpec(
                    num_scalar_prefetch=0,
                    grid=(num_batch_tiles,),
                    in_specs=[
                        pl.BlockSpec((TB, Dp), lambda i: (i, 0)),   # x tile
                        const_spec((n_layers, Dp, Dp)),             # weights (resident)
                        const_spec((n_layers, 1, Dp)),              # biases  (resident)
                    ],
                    out_specs=pl.BlockSpec((TB, Dp), lambda i: (i, 0)),
                ),
                compiler_params=pltpu.CompilerParams(
                    dimension_semantics=("parallel",),   # batch axis -> megacore
                    vmem_limit_bytes=vmem_limit,
                ),
                cost_estimate=cost,
            )

        try:
            out_p = build(single_buffer=True)(x_p, w, b)
        except Exception:
            # pl.Buffered(1) unsupported on this jax version: fall back to
            # default double-buffered resident blocks (identical semantics).
            out_p = build(single_buffer=False)(x_p, w, b)
    else:
        cost = pl.CostEstimate(
            flops=flops, transcendentals=0,
            bytes_accessed=num_batch_tiles * (w_bytes + b_bytes) + io_bytes)
        need = (2 * (Dp * Dp * itemsize + Dp * 4)
                + 4 * TB * Dp * act_itemsize + TB * Dp * 4)
        vmem_limit = int(min(max(int(1.25 * need), 32 * 2 ** 20), budget))
        kernel = functools.partial(_streaming_kernel, n_layers=n_layers,
                                   matmul_dtype=matmul_dtype)
        out_p = pl.pallas_call(
            kernel,
            out_shape=jax.ShapeDtypeStruct((Bp, Dp), x.dtype),
            grid_spec=pltpu.PrefetchScalarGridSpec(
                num_scalar_prefetch=0,
                grid=(num_batch_tiles, n_layers),
                in_specs=[
                    pl.BlockSpec((TB, Dp), lambda i, l: (i, 0)),        # x tile
                    pl.BlockSpec((1, Dp, Dp), lambda i, l: (l, 0, 0)),  # layer weight
                    pl.BlockSpec((1, 1, Dp), lambda i, l: (l, 0, 0)),   # layer bias
                ],
                out_specs=pl.BlockSpec((TB, Dp), lambda i, l: (i, 0)),
                scratch_shapes=[pltpu.VMEM((TB, Dp), jnp.float32)],
            ),
            compiler_params=pltpu.CompilerParams(
                dimension_semantics=("parallel", "arbitrary"),
                vmem_limit_bytes=vmem_limit,
            ),
            cost_estimate=cost,
        )(x_p, w, b)

    return out_p[:B, :D]


# --------------------------- reference / init -------------------------------


def resdnn_reference(x, weights, biases, block_layer_counts):
    """Pure-JAX reference mirroring the PyTorch module (computes every block)."""
    out = x
    li = 0
    for n_layers in block_layer_counts:
        y = x
        for _ in range(n_layers):
            y = jnp.maximum(y @ weights[li].T + biases[li], 0.0)
            li += 1
        out = y + x
    return out


def init_params(key, input_dim, hidden_units):
    """Deterministic init mirroring ResDNN.__init__.

    ResDNN mutates hidden_units[0] = [input_dim] + hidden_units[0]; block 0
    has in_dim=input_dim and layers=original hidden_units[0]; other blocks
    have in_dim=h[0] and layers=h[1:].  All layers are square (D x D) here.
    """
    mutated = [([input_dim] + hidden_units[0])] + [list(h) for h in hidden_units[1:]]
    block_layer_counts = []
    layer_shapes = []
    for sizes in mutated:
        block_layer_counts.append(len(sizes) - 1)
        for i in range(len(sizes) - 1):
            layer_shapes.append((sizes[i], sizes[i + 1]))

    ws, bs = [], []
    for (fan_in, fan_out) in layer_shapes:
        key, kw, kb = jax.random.split(key, 3)
        bound = 1.0 / jnp.sqrt(jnp.float32(fan_in))
        ws.append(jax.random.uniform(kw, (fan_out, fan_in), jnp.float32, -bound, bound))
        bs.append(jax.random.uniform(kb, (1, fan_out), jnp.float32, -bound, bound))
    weights = jnp.stack(ws, axis=0)   # (L, D, D) PyTorch (out, in) layout
    biases = jnp.stack(bs, axis=0)    # (L, 1, D)
    return weights, biases, block_layer_counts


if __name__ == "__main__":
    key = jax.random.PRNGKey(0)
    B, D = 8, 32
    # Last block has 2 layers so the in-kernel layer loop is exercised.
    hidden_units = [[D], [D, D], [D, D, D]]   # as passed to ResDNN(input_dim=D, ...)

    key, kx = jax.random.split(key)
    x = jax.random.normal(kx, (B, D), jnp.float32)

    weights, biases, block_layer_counts = init_params(key, D, hidden_units)
    ref = resdnn_reference(x, weights, biases, block_layer_counts)

    # Exact path: f32 MXU inputs (matches the f32 PyTorch/JAX reference).
    p_f32 = prepare_params(weights, biases, block_layer_counts,
                           matmul_dtype=jnp.float32)
    out_f32 = jax.block_until_ready(resdnn_forward(x, p_f32))
    assert out_f32.shape == (B, D)
    assert jnp.allclose(out_f32, ref, atol=1e-4, rtol=1e-4), "f32 resident mismatch"

    # Fast path: bf16 MXU inputs, f32 accumulation / f32 epilogue.
    p_bf16 = prepare_params(weights, biases, block_layer_counts,
                            matmul_dtype=jnp.bfloat16)
    out_bf16 = jax.block_until_ready(resdnn_forward(x, p_bf16))
    assert out_bf16.shape == (B, D)
    assert jnp.allclose(out_bf16, ref, atol=5e-2, rtol=5e-2), "bf16 resident mismatch"

    # Layer-streaming path (auto-selected when the weight stack exceeds the
    # per-generation VMEM budget); exercised explicitly here for correctness.
    out_stream = jax.block_until_ready(
        resdnn_forward(x, p_f32, force_streaming=True))
    assert jnp.allclose(out_stream, ref, atol=1e-4, rtol=1e-4), "streaming mismatch"

    print("KERNEL_OK")
</pallas_src>

<mosaic_0001>
module attributes {stable_mosaic.version = 11 : i64} {
  func.func @_resident_kernel(%arg0: i32, %arg1: memref<16x128xf32, #tpu.memory_space<vmem>>, %arg2: memref<2x128x128xf32, #tpu.memory_space<vmem>>, %arg3: memref<2x1x128xf32, #tpu.memory_space<vmem>>, %arg4: memref<16x128xf32, #tpu.memory_space<vmem>>) attributes {dimension_semantics = [#tpu.dimension_semantics<parallel>], iteration_bounds = array<i64: 1>, scalar_prefetch = 0 : i64, scratch_operands = 0 : i64, tpu.core_type = #tpu.core_type<tc>, window_params = [{transform_indices = @transform_0, window_bounds = array<i64: 16, 128>}, {pipeline_mode = #tpu.pipeline_mode<synchronous>, transform_indices = @transform_1, window_bounds = array<i64: 2, 128, 128>}, {pipeline_mode = #tpu.pipeline_mode<synchronous>, transform_indices = @transform_2, window_bounds = array<i64: 2, 1, 128>}, {transform_indices = @transform_3, window_bounds = array<i64: 16, 128>}]} {
    %c0 = arith.constant 0 : index
    %c0_0 = arith.constant 0 : index
    %0 = vector.load %arg1[%c0, %c0_0] : memref<16x128xf32, #tpu.memory_space<vmem>>, vector<16x128xf32>
    %c0_1 = arith.constant 0 : index
    %c0_2 = arith.constant 0 : index
    %c0_3 = arith.constant 0 : index
    %1 = vector.load %arg2[%c0_1, %c0_2, %c0_3] : memref<2x128x128xf32, #tpu.memory_space<vmem>>, vector<1x128x128xf32>
    %2 = vector.shape_cast %1 : vector<1x128x128xf32> to vector<128x128xf32>
    %cst = arith.constant dense<0.000000e+00> : vector<16x128xf32>
    %3 = tpu.matmul %0, %2, %cst {dimension_numbers = #tpu.dot_dimension_numbers<[1], [0], [0], [1], [0, 0, 1, 1], [], []>} : vector<16x128xf32>, vector<128x128xf32>, vector<16x128xf32> -> vector<16x128xf32>
    %c0_4 = arith.constant 0 : index
    %c0_5 = arith.constant 0 : index
    %c0_6 = arith.constant 0 : index
    %4 = vector.load %arg3[%c0_4, %c0_5, %c0_6] : memref<2x1x128xf32, #tpu.memory_space<vmem>>, vector<1x1x128xf32>
    %5 = vector.shape_cast %4 : vector<1x1x128xf32> to vector<1x128xf32>
    %6 = vector.broadcast %5 : vector<1x128xf32> to vector<16x128xf32>
    %7 = arith.addf %3, %6 : vector<16x128xf32>
    %cst_7 = arith.constant 0.000000e+00 : f32
    %8 = vector.broadcast %cst_7 : f32 to vector<16x128xf32>
    %9 = arith.maximumf %7, %8 : vector<16x128xf32>
    %c1 = arith.constant 1 : index
    %c0_8 = arith.constant 0 : index
    %c0_9 = arith.constant 0 : index
    %10 = vector.load %arg2[%c1, %c0_8, %c0_9] : memref<2x128x128xf32, #tpu.memory_space<vmem>>, vector<1x128x128xf32>
    %11 = vector.shape_cast %10 : vector<1x128x128xf32> to vector<128x128xf32>
    %cst_10 = arith.constant dense<0.000000e+00> : vector<16x128xf32>
    %12 = tpu.matmul %9, %11, %cst_10 {dimension_numbers = #tpu.dot_dimension_numbers<[1], [0], [0], [1], [0, 0, 1, 1], [], []>} : vector<16x128xf32>, vector<128x128xf32>, vector<16x128xf32> -> vector<16x128xf32>
    %c1_11 = arith.constant 1 : index
    %c0_12 = arith.constant 0 : index
    %c0_13 = arith.constant 0 : index
    %13 = vector.load %arg3[%c1_11, %c0_12, %c0_13] : memref<2x1x128xf32, #tpu.memory_space<vmem>>, vector<1x1x128xf32>
    %14 = vector.shape_cast %13 : vector<1x1x128xf32> to vector<1x128xf32>
    %15 = vector.broadcast %14 : vector<1x128xf32> to vector<16x128xf32>
    %16 = arith.addf %12, %15 : vector<16x128xf32>
    %cst_14 = arith.constant 0.000000e+00 : f32
    %17 = vector.broadcast %cst_14 : f32 to vector<16x128xf32>
    %18 = arith.maximumf %16, %17 : vector<16x128xf32>
    %c0_15 = arith.constant 0 : index
    %c0_16 = arith.constant 0 : index
    %19 = vector.load %arg1[%c0_15, %c0_16] : memref<16x128xf32, #tpu.memory_space<vmem>>, vector<16x128xf32>
    %20 = arith.addf %18, %19 : vector<16x128xf32>
    %c0_17 = arith.constant 0 : index
    %c0_18 = arith.constant 0 : index
    %21 = vector.load %arg4[%c0_17, %c0_18] : memref<16x128xf32, #tpu.memory_space<vmem>>, vector<16x128xf32>
    tpu.vector_store %arg4[%c0_17, %c0_18], %20 {strides = array<i32>} : memref<16x128xf32, #tpu.memory_space<vmem>>, vector<16x128xf32>,
    return
  }
  func.func @transform_0(%arg0: i32) -> (i32, i32) {
    %c0_i32 = arith.constant 0 : i32
    %c0_i32_0 = arith.constant 0 : i32
    return %arg0, %c0_i32 : i32, i32
  }
  func.func @transform_1(%arg0: i32) -> (i32, i32, i32) {
    %c0_i32 = arith.constant 0 : i32
    %c0_i32_0 = arith.constant 0 : i32
    %c0_i32_1 = arith.constant 0 : i32
    %c0_i32_2 = arith.constant 0 : i32
    return %c0_i32, %c0_i32_0, %c0_i32_1 : i32, i32, i32
  }
  func.func @transform_2(%arg0: i32) -> (i32, i32, i32) {
    %c0_i32 = arith.constant 0 : i32
    %c0_i32_0 = arith.constant 0 : i32
    %c0_i32_1 = arith.constant 0 : i32
    %c0_i32_2 = arith.constant 0 : i32
    return %c0_i32, %c0_i32_0, %c0_i32_1 : i32, i32, i32
  }
  func.func @transform_3(%arg0: i32) -> (i32, i32) {
    %c0_i32 = arith.constant 0 : i32
    %c0_i32_0 = arith.constant 0 : i32
    return %arg0, %c0_i32 : i32, i32
  }
}

module attributes {stable_mosaic.version = 11 : i64} {
  func.func @_resident_kernel(%arg0: i32, %arg1: memref<16x128xf32, #tpu.memory_space<vmem>>, %arg2: memref<2x128x128xf32, #tpu.memory_space<vmem>>, %arg3: memref<2x1x128xf32, #tpu.memory_space<vmem>>, %arg4: memref<16x128xf32, #tpu.memory_space<vmem>>) attributes {dimension_semantics = [#tpu.dimension_semantics<parallel>], iteration_bounds = array<i64: 1>, scalar_prefetch = 0 : i64, scratch_operands = 0 : i64, tpu.core_type = #tpu.core_type<tc>, window_params = [{transform_indices = @transform_0, window_bounds = array<i64: 16, 128>}, {pipeline_mode = #tpu.pipeline_mode<synchronous>, transform_indices = @transform_1, window_bounds = array<i64: 2, 128, 128>}, {pipeline_mode = #tpu.pipeline_mode<synchronous>, transform_indices = @transform_2, window_bounds = array<i64: 2, 1, 128>}, {transform_indices = @transform_3, window_bounds = array<i64: 16, 128>}]} {
    %c0 = arith.constant 0 : index
    %c0_0 = arith.constant 0 : index
    %0 = vector.load %arg1[%c0, %c0_0] : memref<16x128xf32, #tpu.memory_space<vmem>>, vector<16x128xf32>
    %c0_1 = arith.constant 0 : index
    %c0_2 = arith.constant 0 : index
    %c0_3 = arith.constant 0 : index
    %1 = vector.load %arg2[%c0_1, %c0_2, %c0_3] : memref<2x128x128xf32, #tpu.memory_space<vmem>>, vector<1x128x128xf32>
    %2 = vector.shape_cast %1 : vector<1x128x128xf32> to vector<128x128xf32>
    %cst = arith.constant dense<0.000000e+00> : vector<16x128xf32>
    %3 = tpu.matmul %0, %2, %cst {dimension_numbers = #tpu.dot_dimension_numbers<[1], [0], [0], [1], [0, 0, 1, 1], [], []>} : vector<16x128xf32>, vector<128x128xf32>, vector<16x128xf32> -> vector<16x128xf32>
    %c0_4 = arith.constant 0 : index
    %c0_5 = arith.constant 0 : index
    %c0_6 = arith.constant 0 : index
    %4 = vector.load %arg3[%c0_4, %c0_5, %c0_6] : memref<2x1x128xf32, #tpu.memory_space<vmem>>, vector<1x1x128xf32>
    %5 = vector.shape_cast %4 : vector<1x1x128xf32> to vector<1x128xf32>
    %6 = vector.broadcast %5 : vector<1x128xf32> to vector<16x128xf32>
    %7 = arith.addf %3, %6 : vector<16x128xf32>
    %cst_7 = arith.constant 0.000000e+00 : f32
    %8 = vector.broadcast %cst_7 : f32 to vector<16x128xf32>
    %9 = arith.maximumf %7, %8 : vector<16x128xf32>
    %c1 = arith.constant 1 : index
    %c0_8 = arith.constant 0 : index
    %c0_9 = arith.constant 0 : index
    %10 = vector.load %arg2[%c1, %c0_8, %c0_9] : memref<2x128x128xf32, #tpu.memory_space<vmem>>, vector<1x128x128xf32>
    %11 = vector.shape_cast %10 : vector<1x128x128xf32> to vector<128x128xf32>
    %cst_10 = arith.constant dense<0.000000e+00> : vector<16x128xf32>
    %12 = tpu.matmul %9, %11, %cst_10 {dimension_numbers = #tpu.dot_dimension_numbers<[1], [0], [0], [1], [0, 0, 1, 1], [], []>} : vector<16x128xf32>, vector<128x128xf32>, vector<16x128xf32> -> vector<16x128xf32>
    %c1_11 = arith.constant 1 : index
    %c0_12 = arith.constant 0 : index
    %c0_13 = arith.constant 0 : index
    %13 = vector.load %arg3[%c1_11, %c0_12, %c0_13] : memref<2x1x128xf32, #tpu.memory_space<vmem>>, vector<1x1x128xf32>
    %14 = vector.shape_cast %13 : vector<1x1x128xf32> to vector<1x128xf32>
    %15 = vector.broadcast %14 : vector<1x128xf32> to vector<16x128xf32>
    %16 = arith.addf %12, %15 : vector<16x128xf32>
    %cst_14 = arith.constant 0.000000e+00 : f32
    %17 = vector.broadcast %cst_14 : f32 to vector<16x128xf32>
    %18 = arith.maximumf %16, %17 : vector<16x128xf32>
    %c0_15 = arith.constant 0 : index
    %c0_16 = arith.constant 0 : index
    %19 = vector.load %arg1[%c0_15, %c0_16] : memref<16x128xf32, #tpu.memory_space<vmem>>, vector<16x128xf32>
    %20 = arith.addf %18, %19 : vector<16x128xf32>
    %c0_17 = arith.constant 0 : index
    %c0_18 = arith.constant 0 : index
    %21 = vector.load %arg4[%c0_17, %c0_18] : memref<16x128xf32, #tpu.memory_space<vmem>>, vector<16x128xf32>
    tpu.vector_store %arg4[%c0_17, %c0_18], %20 {strides = array<i32>} : memref<16x128xf32, #tpu.memory_space<vmem>>, vector<16x128xf32>,
    return
  }
  func.func @transform_0(%arg0: i32) -> (i32, i32) {
    %c0_i32 = arith.constant 0 : i32
    %c0_i32_0 = arith.constant 0 : i32
    return %arg0, %c0_i32 : i32, i32
  }
  func.func @transform_1(%arg0: i32) -> (i32, i32, i32) {
    %c0_i32 = arith.constant 0 : i32
    %c0_i32_0 = arith.constant 0 : i32
    %c0_i32_1 = arith.constant 0 : i32
    %c0_i32_2 = arith.constant 0 : i32
    return %c0_i32, %c0_i32_0, %c0_i32_1 : i32, i32, i32
  }
  func.func @transform_2(%arg0: i32) -> (i32, i32, i32) {
    %c0_i32 = arith.constant 0 : i32
    %c0_i32_0 = arith.constant 0 : i32
    %c0_i32_1 = arith.constant 0 : i32
    %c0_i32_2 = arith.constant 0 : i32
    return %c0_i32, %c0_i32_0, %c0_i32_1 : i32, i32, i32
  }
  func.func @transform_3(%arg0: i32) -> (i32, i32) {
    %c0_i32 = arith.constant 0 : i32
    %c0_i32_0 = arith.constant 0 : i32
    return %arg0, %c0_i32 : i32, i32
  }
}

</mosaic_0001>

<bundles_post_ra>
// kernel: tpu_custom_call.1
= control target key start
LH: loop header
LB: loop body
LE: loop exit
PB: predicated region body
PF: predicated region fallthrough
CT: control target
= control target key end

     0   :  { %8 = vsyncpa [#allocation3], 0  ;;  %s599_s0 = inlined_call_operand.hbm [shape: f32[16,128], index: 0, kind: input, shape index: {}]   ;;  %s600_s1 = inlined_call_operand.hbm [shape: f32[2,128,128], index: 1, kind: input, shape index: {}]   ;;  %s601_s2 = inlined_call_operand.vmem [shape: f32[2,1,128], index: 2, kind: input, shape index: {}]   ;;  %s602_s3 = inlined_call_operand.hbm [shape: f32[16,128], index: 3, kind: output, shape index: {}]  }
   0x1   :  { %9 = vsyncpa [#allocation6], 0 }
   0x2   :  { %10 = vsyncpa [#allocation4], 0  ;;  %s519_s12 = smov [#allocation2]   ;;  %s447_s16 = scalar_lea.hbm %s599_s0, 256 }
   0x3   :  { %s16_s13 = sshll.u32 %s519_s12, 4  ;;  %p448_p0 = scmp.ne.s32.totalorder %s599_s0, %s447_s16  ;;  %s17_s13 = int_to_ptr.vmem [resolvable:$true] %s16_s13 }
   0x4   :  { %p451_p1 = scmp.lt.u32.totalorder %s447_s16, %s599_s0 }
   0x6   :  { %p453_p2 = pnand %p451_p1, %p448_p0 }
   0x8   :  { %456 = shalt.err (!%p453_p2)
}
   0x9   :  { %s457_s21 = scalar_lea.vmem %s17_s13, 256  ;;  %p462_p4 = scmp.lt.s32.totalorder %s17_s13, %s17_s13 }
   0xa   :  { %p458_p3 = scmp.ne.s32.totalorder %s17_s13, %s457_s21  ;;  %p463_p5 = scmp.lt.s32.totalorder %s457_s21, %s457_s21 }
   0xc   :  { %p464_p6 = por %p463_p5, %p462_p4 }
   0xe   :  { %p465_p7 = pnand %p464_p6, %p458_p3 }
  0x10   :  { %468 = shalt.err (!%p465_p7)
}
  0x11   :  { %s520_s22 = smov 128   ;;  %s521_s23 = smov 8  }
  0x12   :  { %22 = dma.hbm_to_vmem [thread:$0]  %s599_s0, 256, %s17_s13, [#allocation3], %s520_s22, %s520_s22, %s521_s23  }
  0x13   :  { %s522_s26 = smov [#allocation5]   ;;  %s469_s30 = scalar_lea.hbm %s600_s1, 4096 }
  0x14   :  { %s28_s27 = sshll.u32 %s522_s26, 4  ;;  %p470_p8 = scmp.ne.s32.totalorder %s600_s1, %s469_s30  ;;  %s29_s27 = int_to_ptr.vmem [resolvable:$true] %s28_s27 }
  0x15   :  { %p473_p9 = scmp.lt.u32.totalorder %s469_s30, %s600_s1 }
  0x17   :  { %p475_p10 = pnand %p473_p9, %p470_p8 }
  0x19   :  { %478 = shalt.err (!%p475_p10)
}
  0x1a   :  { %s479_s8 = scalar_lea.vmem %s29_s27, 4096  ;;  %p484_p12 = scmp.lt.s32.totalorder %s29_s27, %s29_s27 }
  0x1b   :  { %p480_p11 = scmp.ne.s32.totalorder %s29_s27, %s479_s8  ;;  %p485_p13 = scmp.lt.s32.totalorder %s479_s8, %s479_s8 }
  0x1d   :  { %p486_p0 = por %p485_p13, %p484_p12 }
  0x1f   :  { %p487_p1 = pnand %p486_p0, %p480_p11 }
  0x21   :  { %490 = shalt.err (!%p487_p1)
}
  0x22   :  { %34 = dma.hbm_to_vmem [thread:$0]  %s600_s1, 4096, %s29_s27, [#allocation6], %s520_s22, %s520_s22, %s521_s23  }
  0x23   :  { %513 = dma.done.wait [#allocation3], 256  }
  0x24   :  { %514 = vsyncadd [#allocation3], 4294967040 }
  0x25   :  { %515 = dma.done.wait [#allocation6], 4096  }
  0x26   :  { %516 = vsyncadd [#allocation6], 4294963200  ;;  %v45_v0 = vld [vmem:[#allocation5] sm:$0xff]  ;;  %v46_v1 = vld [vmem:[#allocation5 + $0x8] sm:$0xff]  ;;  %s523_s13 = smov [#allocation7]  }
  0x27   :  { %v47_v2 = vld [vmem:[#allocation5 + $0x10] sm:$0xff]  ;;  %v378_v3 = vpack.c.bf16 %v46_v1, %v45_v0  ;;  %v48_v4 = vld [vmem:[#allocation5 + $0x18] sm:$0xff]  ;;  %v49_v6 = vld [vmem:[#allocation5 + $0x20] sm:$0xff]  ;;  %s256_s14 = sshll.u32 %s523_s13, 4  ;;  %s257_s14 = int_to_ptr.vmem [resolvable:$true] %s256_s14 }
  0x28   :  { %v382_v5 = vpack.c.bf16 %v48_v4, %v47_v2  ;;  %v50_v7 = vld [vmem:[#allocation5 + $0x28] sm:$0xff]  ;;  %v51_v9 = vld [vmem:[#allocation5 + $0x30] sm:$0xff]  ;;  %v52_v10 = vld [vmem:[#allocation5 + $0x38] sm:$0xff]  ;;  %s491_s15 = scalar_lea.vmem %s257_s14, 256  ;;  %p496_p3 = scmp.lt.s32.totalorder %s257_s14, %s257_s14 }
  0x29   :  { %379 = vmatprep.subr.bf16.mxu0 %v378_v3  ;;  %v386_v8 = vpack.c.bf16 %v50_v7, %v49_v6  ;;  %v574_v11 = vld [vmem:[#allocation2] sm:$0xff]  ;;  %v146_v12 = vld [vmem:[#allocation5 + $0x80] sm:$0xff]  ;;  %v147_v13 = vld [vmem:[#allocation5 + $0x88] sm:$0xff]  ;;  %v390_v20 = vpack.c.bf16 %v52_v10, %v51_v9  ;;  %p492_p2 = scmp.ne.s32.totalorder %s257_s14, %s491_s15  ;;  %p497_p4 = scmp.lt.s32.totalorder %s491_s15, %s491_s15 }
  0x2a   :  { %381 = vmatpush3.bf16.msra.mxu0 %v378_v3  ;;  %340 = vmatprep.mubr.f32.mxu0 %v574_v11  ;;  %v148_v14 = vld [vmem:[#allocation5 + $0x90] sm:$0xff]  ;;  %v410_v15 = vpack.c.bf16 %v147_v13, %v146_v12  ;;  %v149_v16 = vld [vmem:[#allocation5 + $0x98] sm:$0xff]  ;;  %v150_v18 = vld [vmem:[#allocation5 + $0xa0] sm:$0xff] }
  0x2b   :  { %383 = vmatprep.subr.bf16.mxu0 %v382_v5  ;;  %v414_v17 = vpack.c.bf16 %v149_v16, %v148_v14  ;;  %v151_v19 = vld [vmem:[#allocation5 + $0xa8] sm:$0xff]  ;;  %v53_v21 = vld [vmem:[#allocation5 + $0x40] sm:$0xff]  ;;  %v152_v24 = vld [vmem:[#allocation5 + $0xb0] sm:$0xff]  ;;  %p498_p5 = por %p497_p4, %p496_p3 }
  0x2c   :  { %411 = vmatprep.subr.bf16.mxu1 %v410_v15  ;;  %v54_v22 = vld [vmem:[#allocation5 + $0x48] sm:$0xff]  ;;  %v418_v23 = vpack.c.bf16 %v151_v19, %v150_v18  ;;  %v153_v25 = vld [vmem:[#allocation5 + $0xb8] sm:$0xff]  ;;  %v55_v27 = vld [vmem:[#allocation5 + $0x50] sm:$0xff] }
  0x2d   :  { %413 = vmatpush3.bf16.msra.mxu1 %v410_v15  ;;  %v394_v26 = vpack.c.bf16 %v54_v22, %v53_v21  ;;  %v56_v28 = vld [vmem:[#allocation5 + $0x58] sm:$0xff]  ;;  %v422_v29 = vpack.c.bf16 %v153_v25, %v152_v24  ;;  %v154_v30 = vld [vmem:[#allocation5 + $0xc0] sm:$0xff]  ;;  %v155_v31 = vld [vmem:[#allocation5 + $0xc8] sm:$0xff]  ;;  %p499_p6 = pnand %p498_p5, %p492_p2 }
  0x2e   :  { %385 = vmatpush3.bf16.msra.mxu0 %v382_v5  ;;  %415 = vmatprep.subr.bf16.mxu1 %v414_v17  ;;  %v398_v32 = vpack.c.bf16 %v56_v28, %v55_v27  ;;  %v57_v33 = vld [vmem:[#allocation5 + $0x60] sm:$0xff]  ;;  %v58_v34 = vld [vmem:[#allocation5 + $0x68] sm:$0xff]  ;;  %v426_v35 = vpack.c.bf16 %v155_v31, %v154_v30  ;;  %v156_v36 = vld [vmem:[#allocation5 + $0xd0] sm:$0xff] }
  0x2f   :  { %387 = vmatprep.subr.bf16.mxu0 %v386_v8  ;;  %v157_v37 = vld [vmem:[#allocation5 + $0xd8] sm:$0xff]  ;;  %v402_v38 = vpack.c.bf16 %v58_v34, %v57_v33  ;;  %v59_v39 = vld [vmem:[#allocation5 + $0x70] sm:$0xff]  ;;  %v158_v42 = vld [vmem:[#allocation5 + $0xe0] sm:$0xff] }
  0x30   :  { %v60_v40 = vld [vmem:[#allocation5 + $0x78] sm:$0xff]  ;;  %v430_v41 = vpack.c.bf16 %v157_v37, %v156_v36  ;;  %v159_v43 = vld [vmem:[#allocation5 + $0xe8] sm:$0xff]  ;;  %v160_v47 = vld [vmem:[#allocation5 + $0xf0] sm:$0xff] }
  0x31   :  { %417 = vmatpush3.bf16.msra.mxu1 %v414_v17  ;;  %v406_v44 = vpack.c.bf16 %v60_v40, %v59_v39  ;;  %v434_v45 = vpack.c.bf16 %v159_v43, %v158_v42  ;;  %v44_v46 = vld [vmem:[#allocation2 + $0x8] sm:$0xff]  ;;  %v269_v50 = vld [vmem:[%s601_s2] ss:$0 sm:$0xff]  ;;  %v271_v57 = vld [vmem:[%s601_s2 + $0x1] ss:$0 sm:$0xff] }
  0x32   :  { %389 = vmatpush3.bf16.msra.mxu0 %v386_v8  ;;  %419 = vmatprep.subr.bf16.mxu1 %v418_v23  ;;  %v161_v48 = vld [vmem:[#allocation5 + $0xf8] sm:$0xff] }
  0x33   :  { %391 = vmatprep.subr.bf16.mxu0 %v390_v20  ;;  %v438_v49 = vpack.c.bf16 %v161_v48, %v160_v47 }
  0x35   :  { %421 = vmatpush3.bf16.msra.mxu1 %v418_v23 }
  0x36   :  { %393 = vmatpush3.bf16.msra.mxu0 %v390_v20  ;;  %423 = vmatprep.subr.bf16.mxu1 %v422_v29 }
  0x37   :  { %395 = vmatprep.subr.bf16.mxu0 %v394_v26 }
  0x39   :  { %425 = vmatpush3.bf16.msra.mxu1 %v422_v29 }
  0x3a   :  { %397 = vmatpush3.bf16.msra.mxu0 %v394_v26  ;;  %427 = vmatprep.subr.bf16.mxu1 %v426_v35 }
  0x3b   :  { %399 = vmatprep.subr.bf16.mxu0 %v398_v32 }
  0x3d   :  { %429 = vmatpush3.bf16.msra.mxu1 %v426_v35 }
  0x3e   :  { %401 = vmatpush3.bf16.msra.mxu0 %v398_v32  ;;  %431 = vmatprep.subr.bf16.mxu1 %v430_v41 }
  0x3f   :  { %403 = vmatprep.subr.bf16.mxu0 %v402_v38 }
  0x41   :  { %433 = vmatpush3.bf16.msra.mxu1 %v430_v41 }
  0x42   :  { %405 = vmatpush3.bf16.msra.mxu0 %v402_v38  ;;  %435 = vmatprep.subr.bf16.mxu1 %v434_v45 }
  0x43   :  { %407 = vmatprep.subr.bf16.mxu0 %v406_v44 }
  0x45   :  { %437 = vmatpush3.bf16.msra.mxu1 %v434_v45 }
  0x46   :  { %409 = vmatpush3.bf16.msra.mxu0 %v406_v44  ;;  %439 = vmatprep.subr.bf16.mxu1 %v438_v49 }
  0x49   :  { %341 = vmatmul.mubr.f32.vlgmr.msra.gmra.mrb[0].mxu0 %v44_v46  ;;  %441 = vmatpush3.bf16.msra.mxu1 %v438_v49 }
 0x11c   :  { %v342_v51 = vpop.f32.mrb[0].mxu0 }
 0x11d   :  { %v140_v52 = vadd.f32 %v342_v51, %v269_v50  ;;  %v134_v53 = vpop.f32.mrb[1].mxu0 }
 0x11e   :  { %v135_v54 = vadd.f32 %v269_v50, %v134_v53 }
 0x11f   :  { %v144_v56 = vmax.f32 %v140_v52, 0.0 }
 0x120   :  { %v143_v55 = vmax.f32 %v135_v54, 0.0 }
 0x122   :  { %375 = vmatprep.mubr.f32.mxu1 %v143_v55 }
 0x123   :  { %376 = vmatmul.mubr.f32.vlgmr.msra.gmra.mrb[0].mxu1 %v144_v56 }
 0x1f6   :  { %v377_v58 = vpop.f32.mrb[0].mxu1 }
 0x1f7   :  { %v242_v59 = vadd.f32 %v377_v58, %v271_v57  ;;  %v236_v60 = vpop.f32.mrb[1].mxu1 }
 0x1f8   :  { %v237_v61 = vadd.f32 %v271_v57, %v236_v60 }
 0x1f9   :  { %v246_v62 = vmax.f32 %v242_v59, 0.0 }
 0x1fa   :  { %v245_v63 = vmax.f32 %v237_v61, 0.0 }
 0x1fb   :  { %v248_v0 = vadd.f32 %v246_v62, %v44_v46 }
 0x1fc   :  { %v247_v1 = vadd.f32 %v245_v63, %v574_v11 }
 0x1fd   :  { %250 = vst [vmem:[#allocation7 + $0x8] sm:$0xff] %v248_v0 }
 0x1fe   :  { %249 = vst [vmem:[#allocation7] sm:$0xff] %v247_v1 }
 0x1ff   :  { %502 = shalt.err (!%p499_p6)
}
 0x200   :  { %s503_s17 = scalar_lea.hbm %s602_s3, 256 }
 0x201   :  { %p504_p7 = scmp.ne.s32.totalorder %s602_s3, %s503_s17  ;;  %p507_p8 = scmp.lt.u32.totalorder %s503_s17, %s602_s3 }
 0x203   :  { %p509_p9 = pnand %p507_p8, %p504_p7 }
 0x205   :  { %512 = shalt.err (!%p509_p9)
}
 0x206   :  { %262 = dma.vmem_to_hbm [thread:$0]  %s257_s14, 256, %s602_s3, [#allocation4], %s520_s22, %s520_s22, %s521_s23  }
 0x207   :  { %517 = dma.done.wait [#allocation4], 256  }
 0x208   :  { %518 = vsyncadd [#allocation4], 4294967040 }
 0x209   :  { %266 = vsyncpa [#allocation3], 1 }
 0x20a   :  { %267 = vsyncpa [#allocation6], 1 }
 0x20b   :  { %268 = vsyncpa [#allocation4], 1 }

// kernel: tpu_custom_call.1
= control target key start
LH: loop header
LB: loop body
LE: loop exit
PB: predicated region body
PF: predicated region fallthrough
CT: control target
= control target key end

     0   :  { %8 = vsyncpa [#allocation3], 0  ;;  %s599_s0 = inlined_call_operand.hbm [shape: f32[16,128], index: 0, kind: input, shape index: {}]   ;;  %s600_s1 = inlined_call_operand.hbm [shape: f32[2,128,128], index: 1, kind: input, shape index: {}]   ;;  %s601_s2 = inlined_call_operand.vmem [shape: f32[2,1,128], index: 2, kind: input, shape index: {}]   ;;  %s602_s3 = inlined_call_operand.hbm [shape: f32[16,128], index: 3, kind: output, shape index: {}]  }
   0x1   :  { %9 = vsyncpa [#allocation6], 0 }
   0x2   :  { %10 = vsyncpa [#allocation4], 0  ;;  %s519_s12 = smov [#allocation2]   ;;  %s447_s16 = scalar_lea.hbm %s599_s0, 256 }
   0x3   :  { %s16_s13 = sshll.u32 %s519_s12, 4  ;;  %p448_p0 = scmp.ne.s32.totalorder %s599_s0, %s447_s16  ;;  %s17_s13 = int_to_ptr.vmem [resolvable:$true] %s16_s13 }
   0x4   :  { %p451_p1 = scmp.lt.u32.totalorder %s447_s16, %s599_s0 }
   0x6   :  { %p453_p2 = pnand %p451_p1, %p448_p0 }
   0x8   :  { %456 = shalt.err (!%p453_p2)
}
   0x9   :  { %s457_s21 = scalar_lea.vmem %s17_s13, 256  ;;  %p462_p4 = scmp.lt.s32.totalorder %s17_s13, %s17_s13 }
   0xa   :  { %p458_p3 = scmp.ne.s32.totalorder %s17_s13, %s457_s21  ;;  %p463_p5 = scmp.lt.s32.totalorder %s457_s21, %s457_s21 }
   0xc   :  { %p464_p6 = por %p463_p5, %p462_p4 }
   0xe   :  { %p465_p7 = pnand %p464_p6, %p458_p3 }
  0x10   :  { %468 = shalt.err (!%p465_p7)
}
  0x11   :  { %s520_s22 = smov 128   ;;  %s521_s23 = smov 8  }
  0x12   :  { %22 = dma.hbm_to_vmem [thread:$0]  %s599_s0, 256, %s17_s13, [#allocation3], %s520_s22, %s520_s22, %s521_s23  }
  0x13   :  { %s522_s26 = smov [#allocation5]   ;;  %s469_s30 = scalar_lea.hbm %s600_s1, 4096 }
  0x14   :  { %s28_s27 = sshll.u32 %s522_s26, 4  ;;  %p470_p8 = scmp.ne.s32.totalorder %s600_s1, %s469_s30  ;;  %s29_s27 = int_to_ptr.vmem [resolvable:$true] %s28_s27 }
  0x15   :  { %p473_p9 = scmp.lt.u32.totalorder %s469_s30, %s600_s1 }
  0x17   :  { %p475_p10 = pnand %p473_p9, %p470_p8 }
  0x19   :  { %478 = shalt.err (!%p475_p10)
}
  0x1a   :  { %s479_s8 = scalar_lea.vmem %s29_s27, 4096  ;;  %p484_p12 = scmp.lt.s32.totalorder %s29_s27, %s29_s27 }
  0x1b   :  { %p480_p11 = scmp.ne.s32.totalorder %s29_s27, %s479_s8  ;;  %p485_p13 = scmp.lt.s32.totalorder %s479_s8, %s479_s8 }
  0x1d   :  { %p486_p0 = por %p485_p13, %p484_p12 }
  0x1f   :  { %p487_p1 = pnand %p486_p0, %p480_p11 }
  0x21   :  { %490 = shalt.err (!%p487_p1)
}
  0x22   :  { %34 = dma.hbm_to_vmem [thread:$0]  %s600_s1, 4096, %s29_s27, [#allocation6], %s520_s22, %s520_s22, %s521_s23  }
  0x23   :  { %513 = dma.done.wait [#allocation3], 256  }
  0x24   :  { %514 = vsyncadd [#allocation3], 4294967040 }
  0x25   :  { %515 = dma.done.wait [#allocation6], 4096  }
  0x26   :  { %516 = vsyncadd [#allocation6], 4294963200  ;;  %v45_v0 = vld [vmem:[#allocation5] sm:$0xff]  ;;  %v46_v1 = vld [vmem:[#allocation5 + $0x8] sm:$0xff]  ;;  %s523_s13 = smov [#allocation7]  }
  0x27   :  { %v47_v2 = vld [vmem:[#allocation5 + $0x10] sm:$0xff]  ;;  %v378_v3 = vpack.c.bf16 %v46_v1, %v45_v0  ;;  %v48_v4 = vld [vmem:[#allocation5 + $0x18] sm:$0xff]  ;;  %v49_v6 = vld [vmem:[#allocation5 + $0x20] sm:$0xff]  ;;  %s256_s14 = sshll.u32 %s523_s13, 4  ;;  %s257_s14 = int_to_ptr.vmem [resolvable:$true] %s256_s14 }
  0x28   :  { %v382_v5 = vpack.c.bf16 %v48_v4, %v47_v2  ;;  %v50_v7 = vld [vmem:[#allocation5 + $0x28] sm:$0xff]  ;;  %v51_v9 = vld [vmem:[#allocation5 + $0x30] sm:$0xff]  ;;  %v52_v10 = vld [vmem:[#allocation5 + $0x38] sm:$0xff]  ;;  %s491_s15 = scalar_lea.vmem %s257_s14, 256  ;;  %p496_p3 = scmp.lt.s32.totalorder %s257_s14, %s257_s14 }
  0x29   :  { %379 = vmatprep.subr.bf16.mxu0 %v378_v3  ;;  %v386_v8 = vpack.c.bf16 %v50_v7, %v49_v6  ;;  %v574_v11 = vld [vmem:[#allocation2] sm:$0xff]  ;;  %v146_v12 = vld [vmem:[#allocation5 + $0x80] sm:$0xff]  ;;  %v147_v13 = vld [vmem:[#allocation5 + $0x88] sm:$0xff]  ;;  %v390_v20 = vpack.c.bf16 %v52_v10, %v51_v9  ;;  %p492_p2 = scmp.ne.s32.totalorder %s257_s14, %s491_s15  ;;  %p497_p4 = scmp.lt.s32.totalorder %s491_s15, %s491_s15 }
  0x2a   :  { %381 = vmatpush3.bf16.msra.mxu0 %v378_v3  ;;  %340 = vmatprep.mubr.f32.mxu0 %v574_v11  ;;  %v148_v14 = vld [vmem:[#allocation5 + $0x90] sm:$0xff]  ;;  %v410_v15 = vpack.c.bf16 %v147_v13, %v146_v12  ;;  %v149_v16 = vld [vmem:[#allocation5 + $0x98] sm:$0xff]  ;;  %v150_v18 = vld [vmem:[#allocation5 + $0xa0] sm:$0xff] }
  0x2b   :  { %383 = vmatprep.subr.bf16.mxu0 %v382_v5  ;;  %v414_v17 = vpack.c.bf16 %v149_v16, %v148_v14  ;;  %v151_v19 = vld [vmem:[#allocation5 + $0xa8] sm:$0xff]  ;;  %v53_v21 = vld [vmem:[#allocation5 + $0x40] sm:$0xff]  ;;  %v152_v24 = vld [vmem:[#allocation5 + $0xb0] sm:$0xff]  ;;  %p498_p5 = por %p497_p4, %p496_p3 }
  0x2c   :  { %411 = vmatprep.subr.bf16.mxu1 %v410_v15  ;;  %v54_v22 = vld [vmem:[#allocation5 + $0x48] sm:$0xff]  ;;  %v418_v23 = vpack.c.bf16 %v151_v19, %v150_v18  ;;  %v153_v25 = vld [vmem:[#allocation5 + $0xb8] sm:$0xff]  ;;  %v55_v27 = vld [vmem:[#allocation5 + $0x50] sm:$0xff] }
  0x2d   :  { %413 = vmatpush3.bf16.msra.mxu1 %v410_v15  ;;  %v394_v26 = vpack.c.bf16 %v54_v22, %v53_v21  ;;  %v56_v28 = vld [vmem:[#allocation5 + $0x58] sm:$0xff]  ;;  %v422_v29 = vpack.c.bf16 %v153_v25, %v152_v24  ;;  %v154_v30 = vld [vmem:[#allocation5 + $0xc0] sm:$0xff]  ;;  %v155_v31 = vld [vmem:[#allocation5 + $0xc8] sm:$0xff]  ;;  %p499_p6 = pnand %p498_p5, %p492_p2 }
  0x2e   :  { %385 = vmatpush3.bf16.msra.mxu0 %v382_v5  ;;  %415 = vmatprep.subr.bf16.mxu1 %v414_v17  ;;  %v398_v32 = vpack.c.bf16 %v56_v28, %v55_v27  ;;  %v57_v33 = vld [vmem:[#allocation5 + $0x60] sm:$0xff]  ;;  %v58_v34 = vld [vmem:[#allocation5 + $0x68] sm:$0xff]  ;;  %v426_v35 = vpack.c.bf16 %v155_v31, %v154_v30  ;;  %v156_v36 = vld [vmem:[#allocation5 + $0xd0] sm:$0xff] }
  0x2f   :  { %387 = vmatprep.subr.bf16.mxu0 %v386_v8  ;;  %v157_v37 = vld [vmem:[#allocation5 + $0xd8] sm:$0xff]  ;;  %v402_v38 = vpack.c.bf16 %v58_v34, %v57_v33  ;;  %v59_v39 = vld [vmem:[#allocation5 + $0x70] sm:$0xff]  ;;  %v158_v42 = vld [vmem:[#allocation5 + $0xe0] sm:$0xff] }
  0x30   :  { %v60_v40 = vld [vmem:[#allocation5 + $0x78] sm:$0xff]  ;;  %v430_v41 = vpack.c.bf16 %v157_v37, %v156_v36  ;;  %v159_v43 = vld [vmem:[#allocation5 + $0xe8] sm:$0xff]  ;;  %v160_v47 = vld [vmem:[#allocation5 + $0xf0] sm:$0xff] }
  0x31   :  { %417 = vmatpush3.bf16.msra.mxu1 %v414_v17  ;;  %v406_v44 = vpack.c.bf16 %v60_v40, %v59_v39  ;;  %v434_v45 = vpack.c.bf16 %v159_v43, %v158_v42  ;;  %v44_v46 = vld [vmem:[#allocation2 + $0x8] sm:$0xff]  ;;  %v269_v50 = vld [vmem:[%s601_s2] ss:$0 sm:$0xff]  ;;  %v271_v57 = vld [vmem:[%s601_s2 + $0x1] ss:$0 sm:$0xff] }
  0x32   :  { %389 = vmatpush3.bf16.msra.mxu0 %v386_v8  ;;  %419 = vmatprep.subr.bf16.mxu1 %v418_v23  ;;  %v161_v48 = vld [vmem:[#allocation5 + $0xf8] sm:$0xff] }
  0x33   :  { %391 = vmatprep.subr.bf16.mxu0 %v390_v20  ;;  %v438_v49 = vpack.c.bf16 %v161_v48, %v160_v47 }
  0x35   :  { %421 = vmatpush3.bf16.msra.mxu1 %v418_v23 }
  0x36   :  { %393 = vmatpush3.bf16.msra.mxu0 %v390_v20  ;;  %423 = vmatprep.subr.bf16.mxu1 %v422_v29 }
  0x37   :  { %395 = vmatprep.subr.bf16.mxu0 %v394_v26 }
  0x39   :  { %425 = vmatpush3.bf16.msra.mxu1 %v422_v29 }
  0x3a   :  { %397 = vmatpush3.bf16.msra.mxu0 %v394_v26  ;;  %427 = vmatprep.subr.bf16.mxu1 %v426_v35 }
  0x3b   :  { %399 = vmatprep.subr.bf16.mxu0 %v398_v32 }
  0x3d   :  { %429 = vmatpush3.bf16.msra.mxu1 %v426_v35 }
  0x3e   :  { %401 = vmatpush3.bf16.msra.mxu0 %v398_v32  ;;  %431 = vmatprep.subr.bf16.mxu1 %v430_v41 }
  0x3f   :  { %403 = vmatprep.subr.bf16.mxu0 %v402_v38 }
  0x41   :  { %433 = vmatpush3.bf16.msra.mxu1 %v430_v41 }
  0x42   :  { %405 = vmatpush3.bf16.msra.mxu0 %v402_v38  ;;  %435 = vmatprep.subr.bf16.mxu1 %v434_v45 }
  0x43   :  { %407 = vmatprep.subr.bf16.mxu0 %v406_v44 }
  0x45   :  { %437 = vmatpush3.bf16.msra.mxu1 %v434_v45 }
  0x46   :  { %409 = vmatpush3.bf16.msra.mxu0 %v406_v44  ;;  %439 = vmatprep.subr.bf16.mxu1 %v438_v49 }
  0x49   :  { %341 = vmatmul.mubr.f32.vlgmr.msra.gmra.mrb[0].mxu0 %v44_v46  ;;  %441 = vmatpush3.bf16.msra.mxu1 %v438_v49 }
 0x11c   :  { %v342_v51 = vpop.f32.mrb[0].mxu0 }
 0x11d   :  { %v140_v52 = vadd.f32 %v342_v51, %v269_v50  ;;  %v134_v53 = vpop.f32.mrb[1].mxu0 }
 0x11e   :  { %v135_v54 = vadd.f32 %v269_v50, %v134_v53 }
 0x11f   :  { %v144_v56 = vmax.f32 %v140_v52, 0.0 }
 0x120   :  { %v143_v55 = vmax.f32 %v135_v54, 0.0 }
 0x122   :  { %375 = vmatprep.mubr.f32.mxu1 %v143_v55 }
 0x123   :  { %376 = vmatmul.mubr.f32.vlgmr.msra.gmra.mrb[0].mxu1 %v144_v56 }
 0x1f6   :  { %v377_v58 = vpop.f32.mrb[0].mxu1 }
 0x1f7   :  { %v242_v59 = vadd.f32 %v377_v58, %v271_v57  ;;  %v236_v60 = vpop.f32.mrb[1].mxu1 }
 0x1f8   :  { %v237_v61 = vadd.f32 %v271_v57, %v236_v60 }
 0x1f9   :  { %v246_v62 = vmax.f32 %v242_v59, 0.0 }
 0x1fa   :  { %v245_v63 = vmax.f32 %v237_v61, 0.0 }
 0x1fb   :  { %v248_v0 = vadd.f32 %v246_v62, %v44_v46 }
 0x1fc   :  { %v247_v1 = vadd.f32 %v245_v63, %v574_v11 }
 0x1fd   :  { %250 = vst [vmem:[#allocation7 + $0x8] sm:$0xff] %v248_v0 }
 0x1fe   :  { %249 = vst [vmem:[#allocation7] sm:$0xff] %v247_v1 }
 0x1ff   :  { %502 = shalt.err (!%p499_p6)
}
 0x200   :  { %s503_s17 = scalar_lea.hbm %s602_s3, 256 }
 0x201   :  { %p504_p7 = scmp.ne.s32.totalorder %s602_s3, %s503_s17  ;;  %p507_p8 = scmp.lt.u32.totalorder %s503_s17, %s602_s3 }
 0x203   :  { %p509_p9 = pnand %p507_p8, %p504_p7 }
 0x205   :  { %512 = shalt.err (!%p509_p9)
}
 0x206   :  { %262 = dma.vmem_to_hbm [thread:$0]  %s257_s14, 256, %s602_s3, [#allocation4], %s520_s22, %s520_s22, %s521_s23  }
 0x207   :  { %517 = dma.done.wait [#allocation4], 256  }
 0x208   :  { %518 = vsyncadd [#allocation4], 4294967040 }
 0x209   :  { %266 = vsyncpa [#allocation3], 1 }
 0x20a   :  { %267 = vsyncpa [#allocation6], 1 }
 0x20b   :  { %268 = vsyncpa [#allocation4], 1 }

</bundles_post_ra>
